<compile_context>
chip_gen: v7x
topology: tpu7x:2x2x1
jax: 0.10.0
libtpu: 0.0.40
codegen_flags: <defaults>
</compile_context>

<pallas_src>
import jax
import jax.numpy as jnp
from jax.experimental import pallas as pl
from jax.experimental.pallas import tpu as pltpu


def _round_up(a: int, m: int) -> int:
    return (a + m - 1) // m * m


def _classifier_kernel(x_ref, w_ref, b_ref, o_ref):
    # x_ref: (TILE_N, H) native dtype (VMEM, streamed, double-buffered)
    # w_ref: (1, H)      x dtype      (VMEM, resident across grid steps)
    # b_ref: (1,)        f32          (SMEM scalar path)
    # o_ref: (TILE_N, 1) f32          (VMEM)
    prod = x_ref[...] * w_ref[...]                       # native-dtype VPU multiply
    logits = jnp.sum(prod.astype(jnp.float32), axis=-1, keepdims=True) + b_ref[0]
    # Exact sigmoid (no approx reciprocal: keeps f32 accuracy); exp uses the EUP slot.
    o_ref[...] = 1.0 / (1.0 + jnp.exp(-logits))


def classifier_forward(x, weight, bias, *, max_tile_n=8192,
                       vmem_budget_bytes=24 * 1024 * 1024):
    """x: [B, S, H] (any float dtype); weight: [1, H]; bias: [1] -> [B, S] f32."""
    B, S, H = x.shape
    N = B * S
    x2d = x.reshape(N, H)                 # pure reshape; NO pad / extra HBM pass
    itemsize = jnp.dtype(x2d.dtype).itemsize

    # --- Row-tile selection (generation-aware VMEM budget) -------------------
    # Per-step VMEM: 2 x (tile_n, H) input buffers + 2 x (tile_n, 1) f32 output
    # buffers; the output block is lane-padded to 128 -> 512 B per row per buffer.
    per_row_bytes = 2 * H * itemsize + 2 * 128 * 4
    mult = 256                            # covers f32/bf16/int8 sublane packing
    rows_fit = (vmem_budget_bytes // per_row_bytes) // mult * mult
    tile_n = max(mult, min(max_tile_n, rows_fit))
    # Megacore (v7x): keep >= ~4 grid steps when there is enough work so both
    # TensorCores get blocks; a single giant tile would serialize onto one core.
    if N > 2 * mult:
        tile_n = min(tile_n, _round_up(pl.cdiv(N, 4), mult))
    # Never use a tile (much) larger than the problem itself.
    min_mult = max(8, 8 * (4 // itemsize))   # f32 -> 8, bf16 -> 16, int8/fp8 -> 32
    tile_n = min(tile_n, _round_up(N, min_mult))

    grid = (pl.cdiv(N, tile_n),)          # ragged last block handled by Pallas

    w2d = weight.reshape(1, H).astype(x2d.dtype)   # bf16 weight for bf16 activations
    b1 = bias.reshape(1).astype(jnp.float32)

    # Explicit scoped-VMEM limit: actual usage + headroom, >= 32 MiB so the
    # larger double buffers are accepted on v5e (16 MiB default scoped limit),
    # and well under v7x's 64 MiB physical VMEM per TensorCore.
    vmem_limit = max(32 * 1024 * 1024,
                     2 * tile_n * H * itemsize + 2 * tile_n * 128 * 4
                     + H * 4 + (2 << 20))

    out = pl.pallas_call(
        _classifier_kernel,
        out_shape=jax.ShapeDtypeStruct((N, 1), jnp.float32),
        grid=grid,
        in_specs=[
            # Streamed activation row tiles (double-buffered by the pipeline).
            # TODO(synk): on v7x, sweep pipeline_mode=pl.Buffered(3) here if
            # profiling shows exposed DMA at step boundaries (+50% input VMEM).
            pl.BlockSpec((tile_n, H), lambda i: (i, 0)),
            pl.BlockSpec((1, H), lambda i: (0, 0)),             # resident weight
            pl.BlockSpec(memory_space=pltpu.MemorySpace.SMEM),  # bias scalar
        ],
        out_specs=pl.BlockSpec((tile_n, 1), lambda i: (i, 0)),
        compiler_params=pltpu.CompilerParams(
            dimension_semantics=("parallel",),
            vmem_limit_bytes=vmem_limit,
        ),
    )(x2d, w2d, b1)

    return out[:, 0].reshape(B, S)        # squeeze(-1)


if __name__ == "__main__":
    key = jax.random.PRNGKey(0)
    kx, kw, kb, kx2, kx3 = jax.random.split(key, 5)

    # --- Case 1: spec-sized f32 input (B=2, S=8, H=32) -----------------------
    B, S, H = 2, 8, 32
    bound = 1.0 / (H ** 0.5)              # PyTorch nn.Linear(H, 1) init range
    weight = jax.random.uniform(kw, (1, H), jnp.float32, -bound, bound)
    bias = jax.random.uniform(kb, (1,), jnp.float32, -bound, bound)
    x = jax.random.normal(kx, (B, S, H), jnp.float32)

    y = jax.block_until_ready(classifier_forward(x, weight, bias))
    y_ref = jax.nn.sigmoid(x @ weight.T + bias).squeeze(-1)
    assert y.shape == (B, S)
    assert jnp.allclose(y, y_ref, atol=1e-5, rtol=1e-5)

    # --- Case 2: ragged N exercising the multi-step grid (no wrapper pad) ----
    B2, S2, H2 = 3, 445, 256              # N = 1335, not a multiple of the tile
    bound2 = 1.0 / (H2 ** 0.5)
    w2 = jax.random.uniform(kw, (1, H2), jnp.float32, -bound2, bound2)
    b2 = jax.random.uniform(kb, (1,), jnp.float32, -bound2, bound2)
    x2 = jax.random.normal(kx2, (B2, S2, H2), jnp.float32)
    y2 = jax.block_until_ready(classifier_forward(x2, w2, b2))
    y2_ref = jax.nn.sigmoid(x2 @ w2.T + b2).squeeze(-1)
    assert y2.shape == (B2, S2)
    assert jnp.allclose(y2, y2_ref, atol=1e-4, rtol=1e-4)

    # --- Case 3: bf16 activations stay bf16 on the wire and in the VPU mul ---
    x3 = jax.random.normal(kx3, (B2, S2, H2), jnp.float32).astype(jnp.bfloat16)
    y3 = jax.block_until_ready(classifier_forward(x3, w2, b2))
    y3_ref = jax.nn.sigmoid(x3.astype(jnp.float32) @ w2.T + b2).squeeze(-1)
    assert jnp.allclose(y3, y3_ref, atol=2e-2, rtol=2e-2)

    print("KERNEL_OK")
</pallas_src>

<mosaic_0001>
module attributes {stable_mosaic.version = 11 : i64} {
  func.func @_classifier_kernel(%arg0: i32, %arg1: memref<16x32xf32, #tpu.memory_space<vmem>>, %arg2: memref<1x32xf32, #tpu.memory_space<vmem>>, %arg3: memref<1xf32, #tpu.memory_space<smem>>, %arg4: memref<16x1xf32, #tpu.memory_space<vmem>>) attributes {dimension_semantics = [#tpu.dimension_semantics<parallel>], iteration_bounds = array<i64: 1>, scalar_prefetch = 0 : i64, scratch_operands = 0 : i64, tpu.core_type = #tpu.core_type<tc>, window_params = [{transform_indices = @transform_0, window_bounds = array<i64: 16, 32>}, {pipeline_mode = #tpu.pipeline_mode<synchronous>, transform_indices = @transform_1, window_bounds = array<i64: 1, 32>}, {transform_indices = @transform_2, window_bounds = array<i64: 1>}, {transform_indices = @transform_3, window_bounds = array<i64: 16, 1>}]} {
    %c0 = arith.constant 0 : index
    %c0_0 = arith.constant 0 : index
    %0 = vector.load %arg1[%c0, %c0_0] : memref<16x32xf32, #tpu.memory_space<vmem>>, vector<16x32xf32>
    %c0_1 = arith.constant 0 : index
    %c0_2 = arith.constant 0 : index
    %1 = vector.load %arg2[%c0_1, %c0_2] : memref<1x32xf32, #tpu.memory_space<vmem>>, vector<1x32xf32>
    %2 = vector.broadcast %1 : vector<1x32xf32> to vector<16x32xf32>
    %3 = arith.mulf %0, %2 : vector<16x32xf32>
    %cst = arith.constant dense<0.000000e+00> : vector<16xf32>
    %4 = vector.multi_reduction <add>, %3, %cst [1] : vector<16x32xf32> to vector<16xf32>
    %5 = vector.shape_cast %4 : vector<16xf32> to vector<16x1xf32>
    %c0_3 = arith.constant 0 : index
    %6 = memref.load %arg3[%c0_3] : memref<1xf32, #tpu.memory_space<smem>>
    %7 = vector.broadcast %6 : f32 to vector<16x1xf32>
    %8 = arith.addf %5, %7 : vector<16x1xf32>
    %cst_4 = arith.constant 0.000000e+00 : f32
    %9 = vector.broadcast %cst_4 : f32 to vector<16x1xf32>
    %10 = arith.subf %9, %8 : vector<16x1xf32>
    %11 = math.exp %10 : vector<16x1xf32>
    %cst_5 = arith.constant 1.000000e+00 : f32
    %12 = vector.broadcast %cst_5 : f32 to vector<16x1xf32>
    %13 = arith.addf %12, %11 : vector<16x1xf32>
    %cst_6 = arith.constant 1.000000e+00 : f32
    %14 = vector.broadcast %cst_6 : f32 to vector<16x1xf32>
    %15 = arith.divf %14, %13 : vector<16x1xf32>
    %c0_7 = arith.constant 0 : index
    %c0_8 = arith.constant 0 : index
    %16 = vector.load %arg4[%c0_7, %c0_8] : memref<16x1xf32, #tpu.memory_space<vmem>>, vector<16x1xf32>
    tpu.vector_store %arg4[%c0_7, %c0_8], %15 {strides = array<i32>} : memref<16x1xf32, #tpu.memory_space<vmem>>, vector<16x1xf32>,
    return
  }
  func.func @transform_0(%arg0: i32) -> (i32, i32) {
    %c0_i32 = arith.constant 0 : i32
    %c0_i32_0 = arith.constant 0 : i32
    return %arg0, %c0_i32 : i32, i32
  }
  func.func @transform_1(%arg0: i32) -> (i32, i32) {
    %c0_i32 = arith.constant 0 : i32
    %c0_i32_0 = arith.constant 0 : i32
    %c0_i32_1 = arith.constant 0 : i32
    return %c0_i32, %c0_i32_0 : i32, i32
  }
  func.func @transform_2(%arg0: i32) -> i32 {
    %c0_i32 = arith.constant 0 : i32
    %c0_i32_0 = arith.constant 0 : i32
    return %c0_i32 : i32
  }
  func.func @transform_3(%arg0: i32) -> (i32, i32) {
    %c0_i32 = arith.constant 0 : i32
    %c0_i32_0 = arith.constant 0 : i32
    return %arg0, %c0_i32 : i32, i32
  }
}

</mosaic_0001>

<bundles_post_ra>
// kernel: tpu_custom_call.1
= control target key start
LH: loop header
LB: loop body
LE: loop exit
PB: predicated region body
PF: predicated region fallthrough
CT: control target
= control target key end

     0   :  { %9 = vsyncpa [#allocation4], 0  ;;  %s107_s12 = smov [#allocation3]   ;;  %s154_s0 = inlined_call_operand.hbm [shape: f32[16,32], index: 0, kind: input, shape index: {}]   ;;  %s155_s1 = inlined_call_operand.vmem [shape: f32[1,32], index: 1, kind: input, shape index: {}]   ;;  %s156_s2 = inlined_call_operand.<no memory space> [shape: f32[1], index: 2, kind: input, shape index: {}]   ;;  %s157_s3 = inlined_call_operand.vmem [shape: f32[16,1], index: 3, kind: output, shape index: {}]  }
   0x1   :  { %s15_s13 = sshll.u32 %s107_s12, 4  ;;  %s83_s16 = scalar_lea.hbm %s154_s0, 256  ;;  %s16_s13 = int_to_ptr.vmem [resolvable:$true] %s15_s13 }
   0x2   :  { %p84_p0 = scmp.ne.s32.totalorder %s154_s0, %s83_s16  ;;  %p87_p1 = scmp.lt.u32.totalorder %s83_s16, %s154_s0 }
   0x4   :  { %p89_p2 = pnand %p87_p1, %p84_p0 }
   0x6   :  { %92 = shalt.err (!%p89_p2)
}
   0x7   :  { %s93_s21 = scalar_lea.vmem %s16_s13, 256  ;;  %p98_p4 = scmp.lt.s32.totalorder %s16_s13, %s16_s13 }
   0x8   :  { %p94_p3 = scmp.ne.s32.totalorder %s16_s13, %s93_s21  ;;  %p99_p5 = scmp.lt.s32.totalorder %s93_s21, %s93_s21 }
   0xa   :  { %p100_p6 = por %p99_p5, %p98_p4 }
   0xc   :  { %p101_p7 = pnand %p100_p6, %p94_p3 }
   0xe   :  { %104 = shalt.err (!%p101_p7)
}
   0xf   :  { %s108_s22 = smov 128   ;;  %s109_s23 = smov 8  }
  0x10   :  { %21 = dma.hbm_to_vmem [thread:$0]  %s154_s0, 256, %s16_s13, [#allocation4], %s108_s22, %s108_s22, %s109_s23  }
  0x11   :  { %105 = dma.done.wait [#allocation4], 256  }
  0x12   :  { %106 = vsyncadd [#allocation4], 4294967040  ;;  %v29_v0 = vld [vmem:[#allocation3] sm:$0xff]  ;;  %vm40_vm0 = vcmask 261120   ;;  %v30_v2 = vld [vmem:[#allocation3 + $0x8] sm:$0xff]  ;;  %v48_v7 = vstv %s156_s2  ;;  %vm63_vm1 = vcmask 7168  }
  0x13   :  { %v71_v1 = vld [vmem:[%s155_s1] ss:$0 sm:$0xff] }
  0x14   :  { %v38_v3 = vmul.f32 %v71_v1, %v29_v0  ;;  %v39_v4 = vmul.f32 %v71_v1, %v30_v2 }
  0x16   :  { %v41_v5 = vsel %vm40_vm0, %v38_v3, 0.0  ;;  %v44_v6 = vsel %vm40_vm0, %v39_v4, 0.0 }
  0x17   :  { %42 = vadd.xlane.f32.xlu0 %v41_v5 }
  0x1b   :  { %45 = vadd.xlane.f32.xlu0 %v44_v6 }
  0xa4   :  { %v43_v8 = vpop.xlane.xlu0 %42 }
  0xa5   :  { %v49_v9 = vadd.f32 %v48_v7, %v43_v8 }
  0xa7   :  { %v51_v10 = vsub.f32 0.0, %v49_v9 }
  0xa8   :  { %v46_v11 = vpop.xlane.xlu0 %45 }
  0xa9   :  { %v53_v12 = vmul.f32 1.442695, %v51_v10  ;;  %v50_v13 = vadd.f32 %v48_v7, %v46_v11 }
  0xab   :  { %75 = vpow2.f32 %v53_v12  ;;  %v52_v14 = vsub.f32 0.0, %v50_v13 }
  0xad   :  { %v55_v15 = vmul.f32 1.442695, %v52_v14 }
  0xaf   :  { %77 = vpow2.f32 %v55_v15 }
  0xb5   :  { %v76_v16 = vpop.eup %75 }
  0xb6   :  { %v57_v17 = vadd.f32 1.0, %v76_v16 }
  0xb8   :  { %79 = vrcp.f32 %v57_v17 }
  0xb9   :  { %v78_v18 = vpop.eup %77 }
  0xba   :  { %v58_v19 = vadd.f32 1.0, %v78_v18 }
  0xbc   :  { %81 = vrcp.f32 %v58_v19 }
  0xc2   :  { %v80_v20 = vpop.eup %79 }
  0xc3   :  { %64 = vst.msk [vmem:[%s157_s3] sm:$0xff] %vm63_vm1, %v80_v20 }
  0xc6   :  { %v82_v21 = vpop.eup %81 }
  0xc7   :  { %65 = vst.msk [vmem:[%s157_s3 + $0x8] sm:$0xff] %vm63_vm1, %v82_v21 }
  0xc8   :  { %70 = vsyncpa [#allocation4], 1 }

</bundles_post_ra>
